<compile_context>
chip_gen: v6e
topology: v6e:2x2x1
jax: 0.10.0
libtpu: 0.0.40
codegen_flags: <defaults>
</compile_context>

<pallas_src>
from functools import partial

import jax
import jax.numpy as jnp
from jax.experimental import pallas as pl
from jax.experimental.pallas import tpu as pltpu


def _round_up(v, m):
    return ((v + m - 1) // m) * m


def attention_base_kernel(x_ref, w1_ref, bw2_ref, wc_ref, out_ref):
    TB, N, F = x_ref.shape               # one block of TB bags
    O = out_ref.shape[1] - N             # classifier width

    b1 = bw2_ref[0:1, :]                 # (1, D)  packed row 0 = b1
    w2 = bw2_ref[1:2, :]                 # (1, D)  packed row 1 = w2 (att = 1)

    x3 = x_ref[...]                      # (TB, N, F) f32
    x2 = x3.reshape(TB * N, F)           # layout-preserving (N = 8 = sublane group)

    # --- attention MLP for all TB*N instances in one MXU matmul ---
    h = jnp.tanh(
        jnp.dot(x2, w1_ref[...], preferred_element_type=jnp.float32) + b1)   # (TB*N, D)
    h3 = h.reshape(TB, N, -1)                                                # (TB, N, D)

    # att = 1: second linear is a lane reduction (b2 dropped: softmax-invariant).
    scores = jnp.sum(h3 * w2, axis=-1, keepdims=True)                        # (TB, N, 1)

    # --- per-bag softmax over the N instances (batched sublane reduces) ---
    m = jnp.max(scores, axis=1, keepdims=True)                               # (TB, 1, 1)
    e = jnp.exp(scores - m)
    att = e / jnp.sum(e, axis=1, keepdims=True)   # exact division (correctness fix)

    # --- attention-weighted pooling for all bags at once: M[b] = A[b] @ x[b] ---
    pooled = jnp.sum(att * x3, axis=1)                                       # (TB, F)

    # --- classifier with folded bias: wc_ref is (F+1, O), row F is the bias ---
    cls = (jnp.dot(pooled, wc_ref[0:F, :], preferred_element_type=jnp.float32)
           + wc_ref[F:F + 1, :])                                             # (TB, O)

    # --- one lane-dense combined output slab per step: [out_prob | attention] ---
    out_ref[:, 0:O] = cls
    out_ref[:, O:O + N] = att.reshape(TB, N)     # tiny relayout, lane-dense A


@partial(jax.jit, static_argnames=("block_bags",))
def attention_base_forward_batched(x, packed_params, block_bags=128):
    """x: (B, N, F) bags. Returns (out_prob (B, out_size), A (B, N))."""
    w1, bw2, wc_aug = packed_params
    x = x.astype(jnp.float32)            # module does x = x.float()
    B, N, F = x.shape
    D = w1.shape[1]
    O = wc_aug.shape[1]

    # Bags per grid step: multiple of 8 (sublane group) so block shapes stay legal.
    TB = min(block_bags, _round_up(B, 8))
    Bp = _round_up(B, TB)
    if Bp != B:
        # Zero-padded bags are harmless (softmax of constant scores, pooled = 0).
        x = jnp.pad(x, ((0, Bp - B), (0, 0), (0, 0)))

    flops = Bp * (2 * N * F * D + 3 * N * D + 4 * N * F + 2 * F * O)
    transcendentals = Bp * (N * D + N)          # tanh + exp
    bytes_accessed = 4 * (Bp * N * F + Bp * (O + N) + F * D + 2 * D + (F + 1) * O)

    out = pl.pallas_call(
        attention_base_kernel,
        out_shape=jax.ShapeDtypeStruct((Bp, O + N), jnp.float32),
        grid_spec=pltpu.PrefetchScalarGridSpec(
            num_scalar_prefetch=0,
            grid=(Bp // TB,),
            in_specs=[
                pl.BlockSpec((TB, N, F), lambda i: (i, 0, 0)),   # per-step bag chunk
                pl.BlockSpec((F, D), lambda i: (0, 0)),          # W1, VMEM-resident
                pl.BlockSpec((2, D), lambda i: (0, 0)),          # [b1; w2], resident
                pl.BlockSpec((F + 1, O), lambda i: (0, 0)),      # [Wc; bc], resident
            ],
            out_specs=pl.BlockSpec((TB, O + N), lambda i: (i, 0)),
        ),
        compiler_params=pltpu.CompilerParams(
            dimension_semantics=("parallel",)),   # shard bag-chunks on v7x 2-TC
        cost_estimate=pl.CostEstimate(
            flops=flops, transcendentals=transcendentals,
            bytes_accessed=bytes_accessed),
    )(x, w1, bw2, wc_aug)

    out = out[:B]
    return out[:, :O], out[:, O:]


def attention_base_forward(x, packed_params):
    """Single bag, matching the PyTorch forward: x (N, F) -> (out (1,O), A (1,N))."""
    out_prob, A = attention_base_forward_batched(x[None], packed_params, block_bags=8)
    return out_prob, A


def init_params(key, in_size, out_size, D=128, att=1):
    """Kaiming-normal weights (fan_in, gain=sqrt(2)), zero biases (like PyTorch)."""
    k1, k2, k3 = jax.random.split(key, 3)
    # stored already transposed for row-vector matmul: (in, out)
    w1 = jax.random.normal(k1, (in_size, D), jnp.float32) * jnp.sqrt(2.0 / in_size)
    b1 = jnp.zeros((D,), jnp.float32)
    w2 = jax.random.normal(k2, (D, att), jnp.float32) * jnp.sqrt(2.0 / D)
    b2 = jnp.zeros((att,), jnp.float32)
    wc = jax.random.normal(k3, (in_size * att, out_size), jnp.float32) * jnp.sqrt(
        2.0 / (in_size * att))
    bc = jnp.zeros((out_size,), jnp.float32)
    return (w1, b1, w2, b2, wc, bc)


def pack_params(params):
    """Pack 6 PyTorch-style params into 4 kernel operands (done once, offline)."""
    w1, b1, w2, b2, wc, bc = params
    # The module hardcodes self.att = 1; the kernel packs exactly that case.
    assert w2.shape[1] == 1, "AttentionBase has att=1; kernel packing assumes it"
    del b2  # softmax(s + b2) == softmax(s); b2 is unused elsewhere in forward
    bw2 = jnp.stack([b1, w2[:, 0]], axis=0)                      # (2, D)
    wc_aug = jnp.concatenate([wc, bc.reshape(1, -1)], axis=0)    # (F+1, O)
    return (w1, bw2, wc_aug)


def reference_forward(x, params):
    """Pure-JAX reference mirroring the PyTorch forward exactly."""
    w1, b1, w2, b2, wc, bc = params
    x = x.astype(jnp.float32)
    a = jnp.tanh(x @ w1 + b1) @ w2 + b2          # (N, 1)
    a = a.T                                      # (1, N)
    a = jax.nn.softmax(a, axis=1)
    m = a @ x                                    # (1, F)
    out = m @ wc + bc                            # (1, O)
    return out, a


if __name__ == "__main__":
    N = 8          # bag size (number of instances)
    in_size = 32   # config.in_size
    out_size = 4   # config.out_size

    key = jax.random.PRNGKey(0)
    kx, kp, kb = jax.random.split(key, 3)
    params = init_params(kp, in_size, out_size)
    packed = pack_params(params)

    # --- single bag (matches the PyTorch module's forward signature) ---
    x = jax.random.normal(kx, (N, in_size), jnp.float32)
    out_prob, A = attention_base_forward(x, packed)
    jax.block_until_ready((out_prob, A))

    ref_out, ref_A = reference_forward(x, params)
    assert out_prob.shape == (1, out_size) and A.shape == (1, N)
    assert jnp.allclose(out_prob, ref_out, atol=1e-3, rtol=1e-3)
    assert jnp.allclose(A, ref_A, atol=1e-3, rtol=1e-3)
    assert jnp.allclose(jnp.sum(A, axis=1), 1.0, atol=1e-5)   # exact softmax now

    # --- batched bags through the grid (weights VMEM-resident; B not a
    #     multiple of the block size to exercise the padding path) ---
    B = 37
    xb = jax.random.normal(kb, (B, N, in_size), jnp.float32)
    outs_b, A_b = attention_base_forward_batched(xb, packed, block_bags=16)
    jax.block_until_ready((outs_b, A_b))

    ref_outs, ref_As = jax.vmap(lambda xi: reference_forward(xi, params))(xb)
    assert outs_b.shape == (B, out_size) and A_b.shape == (B, N)
    assert jnp.allclose(outs_b, ref_outs.reshape(B, out_size), atol=1e-3, rtol=1e-3)
    assert jnp.allclose(A_b, ref_As.reshape(B, N), atol=1e-3, rtol=1e-3)

    print("KERNEL_OK")
</pallas_src>

<mosaic_0001>
module attributes {stable_mosaic.version = 11 : i64} {
  func.func @attention_base_kernel(%arg0: i32, %arg1: memref<8x8x32xf32, #tpu.memory_space<vmem>>, %arg2: memref<32x128xf32, #tpu.memory_space<vmem>>, %arg3: memref<2x128xf32, #tpu.memory_space<vmem>>, %arg4: memref<33x4xf32, #tpu.memory_space<vmem>>, %arg5: memref<8x12xf32, #tpu.memory_space<vmem>>) attributes {dimension_semantics = [#tpu.dimension_semantics<parallel>], iteration_bounds = array<i64: 1>, scalar_prefetch = 0 : i64, scratch_operands = 0 : i64, tpu.core_type = #tpu.core_type<tc>, window_params = [{transform_indices = @transform_0, window_bounds = array<i64: 8, 8, 32>}, {pipeline_mode = #tpu.pipeline_mode<synchronous>, transform_indices = @transform_1, window_bounds = array<i64: 32, 128>}, {pipeline_mode = #tpu.pipeline_mode<synchronous>, transform_indices = @transform_2, window_bounds = array<i64: 2, 128>}, {pipeline_mode = #tpu.pipeline_mode<synchronous>, transform_indices = @transform_3, window_bounds = array<i64: 33, 4>}, {transform_indices = @transform_4, window_bounds = array<i64: 8, 12>}]} {
    %c0 = arith.constant 0 : index
    %c0_0 = arith.constant 0 : index
    %0 = vector.load %arg3[%c0, %c0_0] : memref<2x128xf32, #tpu.memory_space<vmem>>, vector<1x128xf32>
    %c1 = arith.constant 1 : index
    %c0_1 = arith.constant 0 : index
    %1 = vector.load %arg3[%c1, %c0_1] : memref<2x128xf32, #tpu.memory_space<vmem>>, vector<1x128xf32>
    %c0_2 = arith.constant 0 : index
    %c0_3 = arith.constant 0 : index
    %c0_4 = arith.constant 0 : index
    %2 = vector.load %arg1[%c0_2, %c0_3, %c0_4] : memref<8x8x32xf32, #tpu.memory_space<vmem>>, vector<8x8x32xf32>
    %3 = vector.shape_cast %2 : vector<8x8x32xf32> to vector<64x32xf32>
    %c0_5 = arith.constant 0 : index
    %c0_6 = arith.constant 0 : index
    %4 = vector.load %arg2[%c0_5, %c0_6] : memref<32x128xf32, #tpu.memory_space<vmem>>, vector<32x128xf32>
    %cst = arith.constant dense<0.000000e+00> : vector<64x128xf32>
    %5 = tpu.matmul %3, %4, %cst {dimension_numbers = #tpu.dot_dimension_numbers<[1], [0], [0], [1], [0, 0, 1, 1], [], []>} : vector<64x32xf32>, vector<32x128xf32>, vector<64x128xf32> -> vector<64x128xf32>
    %6 = vector.broadcast %0 : vector<1x128xf32> to vector<64x128xf32>
    %7 = arith.addf %5, %6 : vector<64x128xf32>
    %8 = math.tanh %7 : vector<64x128xf32>
    %9 = vector.shape_cast %8 : vector<64x128xf32> to vector<8x8x128xf32>
    %10 = vector.shape_cast %1 : vector<1x128xf32> to vector<1x1x128xf32>
    %11 = vector.broadcast %10 : vector<1x1x128xf32> to vector<8x8x128xf32>
    %12 = arith.mulf %9, %11 : vector<8x8x128xf32>
    %cst_7 = arith.constant dense<0.000000e+00> : vector<8x8xf32>
    %13 = vector.multi_reduction <add>, %12, %cst_7 [2] : vector<8x8x128xf32> to vector<8x8xf32>
    %14 = vector.shape_cast %13 : vector<8x8xf32> to vector<8x8x1xf32>
    %cst_8 = arith.constant dense<0xFF800000> : vector<8x1xf32>
    %15 = vector.multi_reduction <maximumf>, %14, %cst_8 [1] : vector<8x8x1xf32> to vector<8x1xf32>
    %16 = vector.shape_cast %15 : vector<8x1xf32> to vector<8x1x1xf32>
    %17 = vector.broadcast %16 : vector<8x1x1xf32> to vector<8x8x1xf32>
    %18 = arith.subf %14, %17 : vector<8x8x1xf32>
    %19 = math.exp %18 : vector<8x8x1xf32>
    %cst_9 = arith.constant dense<0.000000e+00> : vector<8x1xf32>
    %20 = vector.multi_reduction <add>, %19, %cst_9 [1] : vector<8x8x1xf32> to vector<8x1xf32>
    %21 = vector.shape_cast %20 : vector<8x1xf32> to vector<8x1x1xf32>
    %22 = vector.broadcast %21 : vector<8x1x1xf32> to vector<8x8x1xf32>
    %23 = arith.divf %19, %22 : vector<8x8x1xf32>
    %24 = vector.broadcast %23 : vector<8x8x1xf32> to vector<8x8x32xf32>
    %25 = arith.mulf %24, %2 : vector<8x8x32xf32>
    %cst_10 = arith.constant dense<0.000000e+00> : vector<8x32xf32>
    %26 = vector.multi_reduction <add>, %25, %cst_10 [1] : vector<8x8x32xf32> to vector<8x32xf32>
    %c0_11 = arith.constant 0 : index
    %c0_12 = arith.constant 0 : index
    %27 = vector.load %arg4[%c0_11, %c0_12] : memref<33x4xf32, #tpu.memory_space<vmem>>, vector<32x4xf32>
    %cst_13 = arith.constant dense<0.000000e+00> : vector<8x4xf32>
    %28 = tpu.matmul %26, %27, %cst_13 {dimension_numbers = #tpu.dot_dimension_numbers<[1], [0], [0], [1], [0, 0, 1, 1], [], []>} : vector<8x32xf32>, vector<32x4xf32>, vector<8x4xf32> -> vector<8x4xf32>
    %c32 = arith.constant 32 : index
    %c0_14 = arith.constant 0 : index
    %29 = vector.load %arg4[%c32, %c0_14] : memref<33x4xf32, #tpu.memory_space<vmem>>, vector<1x4xf32>
    %30 = vector.broadcast %29 : vector<1x4xf32> to vector<8x4xf32>
    %31 = arith.addf %28, %30 : vector<8x4xf32>
    %c0_15 = arith.constant 0 : index
    %c0_16 = arith.constant 0 : index
    %32 = vector.load %arg5[%c0_15, %c0_16] : memref<8x12xf32, #tpu.memory_space<vmem>>, vector<8x4xf32>
    tpu.vector_store %arg5[%c0_15, %c0_16], %31 {strides = array<i32>} : memref<8x12xf32, #tpu.memory_space<vmem>>, vector<8x4xf32>,
    %33 = vector.shape_cast %23 : vector<8x8x1xf32> to vector<8x8xf32>
    %c0_17 = arith.constant 0 : index
    %c4 = arith.constant 4 : index
    %34 = vector.load %arg5[%c0_17, %c4] : memref<8x12xf32, #tpu.memory_space<vmem>>, vector<8x8xf32>
    tpu.vector_store %arg5[%c0_17, %c4], %33 {strides = array<i32>} : memref<8x12xf32, #tpu.memory_space<vmem>>, vector<8x8xf32>,
    return
  }
  func.func @transform_0(%arg0: i32) -> (i32, i32, i32) {
    %c0_i32 = arith.constant 0 : i32
    %c0_i32_0 = arith.constant 0 : i32
    %c0_i32_1 = arith.constant 0 : i32
    return %arg0, %c0_i32, %c0_i32_0 : i32, i32, i32
  }
  func.func @transform_1(%arg0: i32) -> (i32, i32) {
    %c0_i32 = arith.constant 0 : i32
    %c0_i32_0 = arith.constant 0 : i32
    %c0_i32_1 = arith.constant 0 : i32
    return %c0_i32, %c0_i32_0 : i32, i32
  }
  func.func @transform_2(%arg0: i32) -> (i32, i32) {
    %c0_i32 = arith.constant 0 : i32
    %c0_i32_0 = arith.constant 0 : i32
    %c0_i32_1 = arith.constant 0 : i32
    return %c0_i32, %c0_i32_0 : i32, i32
  }
  func.func @transform_3(%arg0: i32) -> (i32, i32) {
    %c0_i32 = arith.constant 0 : i32
    %c0_i32_0 = arith.constant 0 : i32
    %c0_i32_1 = arith.constant 0 : i32
    return %c0_i32, %c0_i32_0 : i32, i32
  }
  func.func @transform_4(%arg0: i32) -> (i32, i32) {
    %c0_i32 = arith.constant 0 : i32
    %c0_i32_0 = arith.constant 0 : i32
    return %arg0, %c0_i32 : i32, i32
  }
}

</mosaic_0001>

<bundles_post_ra>
// kernel: attention_base_forward_batched.1
= control target key start
LH: loop header
LB: loop body
LE: loop exit
PB: predicated region body
PF: predicated region fallthrough
CT: control target
= control target key end

     0   :  { %vm35_vm0 = vcmask 261120   ;;  %v673_v46 = vmov 0.0   ;;  %vm674_vm1 = vmmov 0   ;;  %vm418_vm2 = vcmask 1041409   ;;  %s876_s1 = inlined_call_operand.vmem [shape: f32[32,128], index: 1, kind: input, shape index: {}]   ;;  %s877_s0 = inlined_call_operand.vmem [shape: f32[8,8,32], index: 0, kind: input, shape index: {}]   ;;  %s878_s2 = inlined_call_operand.vmem [shape: f32[2,128], index: 2, kind: input, shape index: {}]   ;;  %s879_s3 = inlined_call_operand.vmem [shape: f32[33,4], index: 3, kind: input, shape index: {}]   ;;  %s880_s4 = inlined_call_operand.vmem [shape: f32[8,12], index: 4, kind: output, shape index: {}]  }
   0x1   :  { %v30_v0 = vld [vmem:[%s876_s1 + $0x18] sm:$0xff]  ;;  %v29_v1 = vld [vmem:[%s876_s1 + $0x10] sm:$0xff]  ;;  %v709_v2 = vld [vmem:[%s877_s0] sm:$0xff]  ;;  %612 = vmatprep.subr.mxu1 %v673_v46  ;;  %620 = vmatprep.mubr.msk.f32.mxu1 %vm674_vm1, %v673_v46  ;;  %vm420_vm3 = vcmask 1042434   ;;  %vm422_vm4 = vcmask 1043459   ;;  %vm424_vm5 = vcmask 1044484  }
   0x2   :  { %592 = vmatprep.subr.mxu0 %v30_v0  ;;  %v28_v3 = vld [vmem:[%s876_s1 + $0x8] sm:$0xff]  ;;  %600 = vmatprep.mubr.msk.f32.mxu0 %vm35_vm0, %v709_v2  ;;  %v27_v4 = vld [vmem:[%s876_s1] sm:$0xff]  ;;  %v727_v6 = vld [vmem:[%s877_s0 + $0x10] sm:$0xff]  ;;  %vm426_vm6 = vcmask 1045509   ;;  %vm428_vm7 = vcmask 1046534   ;;  %vm430_vm8 = vcmask 1047559  }
   0x3   :  { %593 = vmatpush3.msra.mxu0 %v30_v0  ;;  %v722_v5 = vld [vmem:[%s877_s0 + $0x8] sm:$0xff]  ;;  %v736_v7 = vld [vmem:[%s877_s0 + $0x18] sm:$0xff]  ;;  %v741_v8 = vld [vmem:[%s877_s0 + $0x20] sm:$0xff]  ;;  %vm504_vm9 = vcmask 31744   ;;  %vm557_vm10 = vcmask 97312  }
   0x4   :  { %594 = vmatprep.subr.mxu0 %v29_v1  ;;  %v750_v9 = vld [vmem:[%s877_s0 + $0x28] sm:$0xff]  ;;  %v755_v10 = vld [vmem:[%s877_s0 + $0x30] sm:$0xff]  ;;  %v764_v11 = vld [vmem:[%s877_s0 + $0x38] sm:$0xff] }
   0x5   :  { %595 = vmatpush3.msra.mxu0 %v29_v1  ;;  %v563_v12 = vld [vmem:[%s878_s2] ss:$0 sm:$0xff]  ;;  %v572_v28 = vld [vmem:[%s878_s2 + $0x1] ss:$0 sm:$0xff]  ;;  %v404_v47 = vld [vmem:[%s879_s3 + $0x18] sm:$0xff] }
   0x6   :  { %596 = vmatprep.subr.mxu0 %v28_v3  ;;  %v403_v48 = vld [vmem:[%s879_s3 + $0x10] sm:$0xff]  ;;  %613 = vmatpush3.msra.mxu1 %v404_v47  ;;  %v402_v49 = vld [vmem:[%s879_s3 + $0x8] sm:$0xff]  ;;  %v401_v50 = vld [vmem:[%s879_s3] sm:$0xff] }
   0x7   :  { %597 = vmatpush3.msra.mxu0 %v28_v3  ;;  %614 = vmatprep.subr.mxu1 %v673_v46 }
   0x8   :  { %598 = vmatprep.subr.mxu0 %v27_v4  ;;  %615 = vmatpush3.msra.mxu1 %v403_v48 }
   0x9   :  { %599 = vmatpush3.msra.mxu0 %v27_v4  ;;  %616 = vmatprep.subr.mxu1 %v673_v46 }
   0xa   :  { %601 = vmatmul.mubr.msk.f32.vlgmr.msra.gmra.mxu0 %vm35_vm0, %v722_v5  ;;  %617 = vmatpush3.msra.mxu1 %v402_v49 }
   0xb   :  { %603 = vmatprep.mubr.msk.f32.mxu0 %vm35_vm0, %v727_v6  ;;  %618 = vmatprep.subr.mxu1 %v673_v46 }
   0xc   :  { %619 = vmatpush3.msra.mxu1 %v401_v50 }
   0xe   :  { %604 = vmatmul.mubr.msk.f32.gmra.mxu0 %vm35_vm0, %v736_v7 }
   0xf   :  { %606 = vmatprep.mubr.msk.f32.mxu0 %vm35_vm0, %v741_v8 }
  0x12   :  { %607 = vmatmul.mubr.msk.f32.gmra.mxu0 %vm35_vm0, %v750_v9 }
  0x13   :  { %609 = vmatprep.mubr.msk.f32.mxu0 %vm35_vm0, %v755_v10 }
  0x16   :  { %610 = vmatmul.mubr.msk.f32.gmra.mxu0 %vm35_vm0, %v764_v11 }
  0xca   :  { %v602_v13 = vpop.f32.mrf.mxu0 }
  0xcb   :  { %v132_v14 = vadd.f32 %v602_v13, %v563_v12 }
  0xcc   :  { %v126_v15 = vpop.f32.mrf.mxu0 }
  0xcd   :  { %625 = vtanh.f32 %v132_v14  ;;  %v127_v16 = vadd.f32 %v563_v12, %v126_v15 }
  0xce   :  { %v605_v17 = vpop.f32.mrf.mxu0 }
  0xcf   :  { %627 = vtanh.f32 %v127_v16  ;;  %v142_v18 = vadd.f32 %v605_v17, %v563_v12 }
  0xd0   :  { %v136_v19 = vpop.f32.mrf.mxu0 }
  0xd1   :  { %629 = vtanh.f32 %v142_v18  ;;  %v137_v20 = vadd.f32 %v563_v12, %v136_v19 }
  0xd2   :  { %v608_v21 = vpop.f32.mrf.mxu0 }
  0xd3   :  { %631 = vtanh.f32 %v137_v20  ;;  %v152_v22 = vadd.f32 %v608_v21, %v563_v12 }
  0xd4   :  { %v146_v23 = vpop.f32.mrf.mxu0 }
  0xd5   :  { %v147_v24 = vadd.f32 %v563_v12, %v146_v23  ;;  %633 = vtanh.f32 %v152_v22 }
  0xd6   :  { %v611_v25 = vpop.f32.mrf.mxu0 }
  0xd7   :  { %635 = vtanh.f32 %v147_v24  ;;  %v162_v26 = vadd.f32 %v611_v25, %v563_v12 }
  0xd8   :  { %v156_v27 = vpop.f32.mrf.mxu0 }
  0xd9   :  { %v157_v29 = vadd.f32 %v563_v12, %v156_v27  ;;  %637 = vtanh.f32 %v162_v26 }
  0xda   :  { %v626_v30 = vpop.eup %625 }
  0xdb   :  { %639 = vtanh.f32 %v157_v29  ;;  %v178_v31 = vmul.f32 %v626_v30, %v572_v28 }
  0xdc   :  { %v628_v32 = vpop.eup %627 }
  0xdd   :  { %187 = vadd.xlane.f32.xlu0 %v178_v31  ;;  %v177_v35 = vmul.f32 %v628_v32, %v572_v28 }
  0xde   :  { %v630_v33 = vpop.eup %629 }
  0xdf   :  { %v180_v34 = vmul.f32 %v630_v33, %v572_v28 }
  0xe0   :  { %v632_v36 = vpop.eup %631 }
  0xe1   :  { %191 = vadd.xlane.f32.xlu1 %v180_v34  ;;  %185 = vadd.xlane.f32.xlu0 %v177_v35  ;;  %v179_v38 = vmul.f32 %v632_v36, %v572_v28 }
  0xe2   :  { %v634_v37 = vpop.eup %633 }
  0xe3   :  { %v182_v42 = vmul.f32 %v634_v37, %v572_v28 }
  0xe4   :  { %v636_v39 = vpop.eup %635 }
  0xe5   :  { %189 = vadd.xlane.f32.xlu1 %v179_v38  ;;  %v181_v40 = vmul.f32 %v636_v39, %v572_v28 }
  0xe6   :  { %v638_v41 = vpop.eup %637 }
  0xe7   :  { %193 = vadd.xlane.f32.xlu0 %v181_v40  ;;  %v184_v45 = vmul.f32 %v638_v41, %v572_v28 }
  0xe8   :  { %v640_v43 = vpop.eup %639 }
  0xe9   :  { %195 = vadd.xlane.f32.xlu1 %v182_v42  ;;  %v183_v44 = vmul.f32 %v640_v43, %v572_v28 }
  0xeb   :  { %197 = vadd.xlane.f32.xlu0 %v183_v44 }
  0xed   :  { %199 = vadd.xlane.f32.xlu1 %v184_v45 }
 0x166   :  { %v188_v51 = vpop.xlane.xlu0 %187 }
 0x167   :  { %v207_v52 = vrot.slane %v188_v51, 4 }
 0x169   :  { %v208_v53 = vmax.f32 %v188_v51, %v207_v52 }
 0x16a   :  { %v192_v54 = vpop.xlane.xlu1 %191  ;;  %v186_v55 = vpop.xlane.xlu0 %185 }
 0x16b   :  { %v209_v56 = vrot.slane %v208_v53, 2  ;;  %v219_v57 = vrot.slane %v192_v54, 4  ;;  %v201_v58 = vrot.slane %v186_v55, 4 }
 0x16d   :  { %v210_v59 = vmax.f32 %v208_v53, %v209_v56  ;;  %v220_v60 = vmax.f32 %v192_v54, %v219_v57  ;;  %v202_v61 = vmax.f32 %v186_v55, %v201_v58 }
 0x16e   :  { %v190_v62 = vpop.xlane.xlu1 %189 }
 0x16f   :  { %v211_v63 = vrot.slane %v210_v59, 1  ;;  %v221_v0 = vrot.slane %v220_v60, 2  ;;  %v203_v1 = vrot.slane %v202_v61, 2  ;;  %v213_v3 = vrot.slane %v190_v62, 4 }
 0x170   :  { %v194_v4 = vpop.xlane.xlu0 %193 }
 0x171   :  { %v212_v12 = vmax.f32 %v210_v59, %v211_v63  ;;  %v222_v13 = vmax.f32 %v220_v60, %v221_v0  ;;  %v204_v14 = vmax.f32 %v202_v61, %v203_v1  ;;  %v214_v15 = vmax.f32 %v190_v62, %v213_v3 }
 0x172   :  { %v225_v16 = vrot.slane %v194_v4, 4  ;;  %v196_v17 = vpop.xlane.xlu1 %195 }
 0x173   :  { %v250_v18 = vsub.f32 %v188_v51, %v212_v12  ;;  %v223_v19 = vrot.slane %v222_v13, 1  ;;  %v205_v20 = vrot.slane %v204_v14, 1  ;;  %v215_v21 = vrot.slane %v214_v15, 2 }
 0x174   :  { %v226_v22 = vmax.f32 %v194_v4, %v225_v16  ;;  %v231_v23 = vrot.slane %v196_v17, 4  ;;  %v198_v24 = vpop.xlane.xlu0 %197 }
 0x175   :  { %v259_v25 = vmul.f32 1.442695, %v250_v18  ;;  %v224_v26 = vmax.f32 %v222_v13, %v223_v19  ;;  %v206_v27 = vmax.f32 %v204_v14, %v205_v20  ;;  %v216_v28 = vmax.f32 %v214_v15, %v215_v21 }
 0x176   :  { %v227_v29 = vrot.slane %v226_v22, 2  ;;  %v232_v30 = vmax.f32 %v196_v17, %v231_v23  ;;  %v237_v31 = vrot.slane %v198_v24, 4  ;;  %v200_v32 = vpop.xlane.xlu1 %199 }
 0x177   :  { %641 = vpow2.f32 %v259_v25  ;;  %v252_v33 = vsub.f32 %v192_v54, %v224_v26  ;;  %v249_v34 = vsub.f32 %v186_v55, %v206_v27  ;;  %v217_v35 = vrot.slane %v216_v28, 1 }
 0x178   :  { %v228_v36 = vmax.f32 %v226_v22, %v227_v29  ;;  %v233_v37 = vrot.slane %v232_v30, 2  ;;  %v238_v38 = vmax.f32 %v198_v24, %v237_v31  ;;  %v243_v39 = vrot.slane %v200_v32, 4 }
 0x179   :  { %v263_v40 = vmul.f32 1.442695, %v252_v33  ;;  %v257_v41 = vmul.f32 1.442695, %v249_v34  ;;  %v218_v42 = vmax.f32 %v216_v28, %v217_v35 }
 0x17a   :  { %v229_v43 = vrot.slane %v228_v36, 1  ;;  %v234_v44 = vmax.f32 %v232_v30, %v233_v37  ;;  %v239_v45 = vrot.slane %v238_v38, 2  ;;  %v244_v46 = vmax.f32 %v200_v32, %v243_v39 }
 0x17b   :  { %643 = vpow2.f32 %v263_v40  ;;  %v251_v47 = vsub.f32 %v190_v62, %v218_v42 }
 0x17c   :  { %645 = vpow2.f32 %v257_v41  ;;  %v230_v48 = vmax.f32 %v228_v36, %v229_v43  ;;  %v235_v49 = vrot.slane %v234_v44, 1  ;;  %v240_v50 = vmax.f32 %v238_v38, %v239_v45 }
 0x17d   :  { %v261_v51 = vmul.f32 1.442695, %v251_v47  ;;  %v245_v52 = vrot.slane %v244_v46, 2  ;;  %v514_v47 = vlaneseq }
 0x17e   :  { %v253_v53 = vsub.f32 %v194_v4, %v230_v48  ;;  %v236_v54 = vmax.f32 %v234_v44, %v235_v49  ;;  %v241_v55 = vrot.slane %v240_v50, 1 }
 0x17f   :  { %647 = vpow2.f32 %v261_v51  ;;  %v246_v56 = vmax.f32 %v244_v46, %v245_v52 }
 0x180   :  { %v265_v57 = vmul.f32 1.442695, %v253_v53  ;;  %v254_v58 = vsub.f32 %v196_v17, %v236_v54  ;;  %v242_v59 = vmax.f32 %v240_v50, %v241_v55 }
 0x181   :  { %v247_v60 = vrot.slane %v246_v56, 1 }
 0x182   :  { %649 = vpow2.f32 %v265_v57  ;;  %v267_v61 = vmul.f32 1.442695, %v254_v58  ;;  %v255_v63 = vsub.f32 %v198_v24, %v242_v59 }
 0x183   :  { %v248_v0 = vmax.f32 %v246_v56, %v247_v60 }
 0x184   :  { %v786_v62 = vpop.eup %641  ;;  %651 = vpow2.f32 %v267_v61  ;;  %v269_v1 = vmul.f32 1.442695, %v255_v63  ;;  %v515_v61 = vand.u32 127, %v514_v47 }
 0x185   :  { %v279_v3 = vrot.slane %v786_v62, 4  ;;  %v256_v12 = vsub.f32 %v200_v32, %v248_v0 }
 0x186   :  { %653 = vpow2.f32 %v269_v1 }
 0x187   :  { %v280_v4 = vadd.f32 %v786_v62, %v279_v3  ;;  %v271_v13 = vmul.f32 1.442695, %v256_v12 }
 0x188   :  { %v790_v14 = vpop.eup %643 }
 0x189   :  { %v792_v15 = vpop.eup %645  ;;  %v281_v16 = vrot.slane %v280_v4, 2  ;;  %v291_v17 = vrot.slane %v790_v14, 4  ;;  %655 = vpow2.f32 %v271_v13  ;;  %v516_v13 = vadd.s32 4294967292, %v515_v61 }
 0x18a   :  { %v273_v18 = vrot.slane %v792_v15, 4 }
 0x18b   :  { %v282_v19 = vadd.f32 %v281_v16, %v280_v4  ;;  %v292_v20 = vadd.f32 %v790_v14, %v291_v17  ;;  %v518_v16 = vshrl.u32 %v514_v47, 7 }
 0x18c   :  { %v797_v21 = vpop.eup %647  ;;  %v274_v22 = vadd.f32 %v792_v15, %v273_v18 }
 0x18d   :  { %v283_v23 = vrot.slane %v282_v19, 1  ;;  %v293_v24 = vrot.slane %v292_v20, 2  ;;  %v285_v25 = vrot.slane %v797_v21, 4 }
 0x18e   :  { %v275_v26 = vrot.slane %v274_v22, 2 }
 0x18f   :  { %v801_v27 = vpop.eup %649  ;;  %v284_v28 = vadd.f32 %v283_v23, %v282_v19  ;;  %v294_v29 = vadd.f32 %v293_v24, %v292_v20  ;;  %v286_v30 = vadd.f32 %v797_v21, %v285_v25  ;;  %v820_v23 = vsub.s32 %v516_v13, %v518_v16 }
 0x190   :  { %v276_v31 = vadd.f32 %v275_v26, %v274_v22  ;;  %v297_v32 = vrot.slane %v801_v27, 4 }
 0x191   :  { %v805_v33 = vpop.eup %651  ;;  %657 = vrcp.f32 %v284_v28  ;;  %v287_v34 = vrot.slane %v286_v30, 2  ;;  %v295_v35 = vrot.slane %v294_v29, 1 }
 0x192   :  { %v277_v36 = vrot.slane %v276_v31, 1  ;;  %v298_v37 = vadd.f32 %v801_v27, %v297_v32  ;;  %v303_v38 = vrot.slane %v805_v33, 4 }
 0x193   :  { %v809_v39 = vpop.eup %653  ;;  %v288_v40 = vadd.f32 %v287_v34, %v286_v30  ;;  %v296_v41 = vadd.f32 %v295_v35, %v294_v29 }
 0x194   :  { %v278_v42 = vadd.f32 %v277_v36, %v276_v31  ;;  %v299_v43 = vrot.slane %v298_v37, 2  ;;  %v304_v44 = vadd.f32 %v805_v33, %v303_v38  ;;  %v309_v45 = vrot.slane %v809_v39, 4 }
 0x195   :  { %v289_v46 = vrot.slane %v288_v40, 1  ;;  %659 = vrcp.f32 %v296_v41 }
 0x196   :  { %v813_v48 = vpop.eup %655  ;;  %661 = vrcp.f32 %v278_v42  ;;  %v310_v49 = vadd.f32 %v809_v39, %v309_v45  ;;  %v300_v50 = vadd.f32 %v299_v43, %v298_v37  ;;  %v305_v51 = vrot.slane %v304_v44, 2 }
 0x197   :  { %v290_v52 = vadd.f32 %v289_v46, %v288_v40  ;;  %v315_v53 = vrot.slane %v813_v48, 4 }
 0x198   :  { %v301_v54 = vrot.slane %v300_v50, 1  ;;  %v306_v55 = vadd.f32 %v305_v51, %v304_v44  ;;  %v311_v56 = vrot.slane %v310_v49, 2 }
 0x199   :  { %v316_v57 = vadd.f32 %v813_v48, %v315_v53  ;;  %663 = vrcp.f32 %v290_v52 }
 0x19a   :  { %v302_v58 = vadd.f32 %v301_v54, %v300_v50  ;;  %v307_v59 = vrot.slane %v306_v55, 1  ;;  %v312_v60 = vadd.f32 %v311_v56, %v310_v49 }
 0x19b   :  { %v317_v63 = vrot.slane %v316_v57, 2 }
 0x19c   :  { %v308_v0 = vadd.f32 %v307_v59, %v306_v55  ;;  %v313_v1 = vrot.slane %v312_v60, 1  ;;  %665 = vrcp.f32 %v302_v58 }
 0x19d   :  { %v318_v3 = vadd.f32 %v317_v63, %v316_v57 }
 0x19e   :  { %v658_v12 = vpop.eup %657  ;;  %v314_v4 = vadd.f32 %v313_v1, %v312_v60  ;;  %667 = vrcp.f32 %v308_v0 }
 0x19f   :  { %v319_v17 = vrot.slane %v318_v3, 1  ;;  %v324_v18 = vmul.f32 %v658_v12, %v786_v62 }
 0x1a0   :  { %669 = vrcp.f32 %v314_v4 }
 0x1a1   :  { %v320_v19 = vadd.f32 %v319_v17, %v318_v3  ;;  %v338_v20 = vmul.f32 %v324_v18, %v722_v5  ;;  %v524_v34 = vrot.slane %v324_v18, %v820_v23 }
 0x1a2   :  { %v660_v22 = vpop.eup %659 }
 0x1a3   :  { %v662_v24 = vpop.eup %661  ;;  %v328_v25 = vmul.f32 %v660_v22, %v790_v14  ;;  %671 = vrcp.f32 %v320_v19  ;;  %v352_v26 = vsel %vm35_vm0, %v338_v20, 0.0 }
 0x1a4   :  { %v322_v28 = vmul.f32 %v662_v24, %v792_v15  ;;  %v353_v29 = vrot.slane %v352_v26, 4 }
 0x1a5   :  { %v340_v30 = vmul.f32 %v328_v25, %v736_v7  ;;  %v532_v47 = vrot.slane %v328_v25, %v820_v23 }
 0x1a6   :  { %v664_v62 = vpop.eup %663  ;;  %v337_v31 = vmul.f32 %v322_v28, %v709_v2  ;;  %v354_v32 = vadd.f32 %v353_v29, %v352_v26  ;;  %v520_v5 = vrot.slane %v322_v28, %v820_v23 }
 0x1a7   :  { %v326_v35 = vmul.f32 %v664_v62, %v797_v21  ;;  %v366_v14 = vsel %vm35_vm0, %v340_v30, 0.0 }
 0x1a8   :  { %v345_v36 = vsel %vm35_vm0, %v337_v31, 0.0  ;;  %v355_v15 = vrot.slane %v354_v32, 2  ;;  %v367_v37 = vrot.slane %v366_v14, 4  ;;  %v549_v7 = vsel %vm418_vm2, %v524_v34, %v520_v5 }
 0x1a9   :  { %v666_v38 = vpop.eup %665  ;;  %v339_v40 = vmul.f32 %v326_v35, %v727_v6  ;;  %v346_v2 = vrot.slane %v345_v36, 4  ;;  %v528_v41 = vrot.slane %v326_v35, %v820_v23 }
 0x1aa   :  { %v330_v42 = vmul.f32 %v666_v38, %v801_v27  ;;  %v356_v43 = vadd.f32 %v355_v15, %v354_v32  ;;  %v368_v21 = vadd.f32 %v367_v37, %v366_v14 }
 0x1ab   :  { %v668_v44 = vpop.eup %667  ;;  %v347_v45 = vadd.f32 %v346_v2, %v345_v36  ;;  %v359_v46 = vsel %vm35_vm0, %v339_v40, 0.0  ;;  %v550_v49 = vsel %vm420_vm3, %v528_v41, %v549_v7 }
 0x1ac   :  { %v332_v50 = vmul.f32 %v668_v44, %v805_v33  ;;  %v341_v6 = vmul.f32 %v330_v42, %v741_v8  ;;  %v360_v51 = vrot.slane %v359_v46, 4  ;;  %v357_v27 = vrot.slane %v356_v43, 1 }
 0x1ad   :  { %v670_v52 = vpop.eup %669  ;;  %v348_v53 = vrot.slane %v347_v45, 2  ;;  %v369_v54 = vrot.slane %v368_v21, 2  ;;  %v551_v55 = vsel %vm422_vm4, %v532_v47, %v550_v49  ;;  %v536_v8 = vrot.slane %v330_v42, %v820_v23 }
 0x1ae   :  { %v334_v56 = vmul.f32 %v670_v52, %v809_v39  ;;  %v342_v57 = vmul.f32 %v332_v50, %v750_v9  ;;  %v361_v58 = vadd.f32 %v360_v51, %v359_v46  ;;  %v373_v33 = vsel %vm35_vm0, %v341_v6, 0.0 }
 0x1af   :  { %v349_v59 = vadd.f32 %v348_v53, %v347_v45  ;;  %v370_v60 = vadd.f32 %v369_v54, %v368_v21  ;;  %v374_v1 = vrot.slane %v373_v33, 4  ;;  %v358_v9 = vadd.f32 %v357_v27, %v356_v43  ;;  %v573_v27 = vld [vmem:[%s879_s3 + $0x20] ss:$0 sm:$0xff] }
 0x1b0   :  { %v672_v61 = vpop.eup %671  ;;  %v343_v63 = vmul.f32 %v334_v56, %v755_v10  ;;  %v362_v0 = vrot.slane %v361_v58, 2  ;;  %v380_v3 = vsel %vm35_vm0, %v342_v57, 0.0  ;;  %v540_v18 = vrot.slane %v332_v50, %v820_v23 }
 0x1b1   :  { %v336_v39 = vmul.f32 %v672_v61, %v813_v48  ;;  %v350_v12 = vrot.slane %v349_v59, 1  ;;  %v381_v4 = vrot.slane %v380_v3, 4  ;;  %v375_v16 = vadd.f32 %v374_v1, %v373_v33 }
 0x1b2   :  { %v363_v13 = vadd.f32 %v362_v0, %v361_v58  ;;  %v387_v17 = vsel %vm35_vm0, %v343_v63, 0.0  ;;  %v371_v22 = vrot.slane %v370_v60, 1  ;;  %v544_v28 = vrot.slane %v334_v56, %v820_v23 }
 0x1b3   :  { %v344_v19 = vmul.f32 %v336_v39, %v764_v11  ;;  %v351_v20 = vadd.f32 %v350_v12, %v349_v59  ;;  %v382_v10 = vadd.f32 %v381_v4, %v380_v3  ;;  %v376_v25 = vrot.slane %v375_v16, 2 }
 0x1b4   :  { %v364_v24 = vrot.slane %v363_v13, 1  ;;  %v388_v26 = vrot.slane %v387_v17, 4  ;;  %v548_v30 = vrot.slane %v336_v39, %v820_v23  ;;  %v552_v62 = vsel %vm424_vm5, %v536_v8, %v551_v55 }
 0x1b5   :  { %v383_v48 = vrot.slane %v382_v10, 2  ;;  %v394_v29 = vsel %vm35_vm0, %v344_v19, 0.0  ;;  %v377_v32 = vadd.f32 %v376_v25, %v375_v16  ;;  %v372_v11 = vadd.f32 %v371_v22, %v370_v60 }
 0x1b6   :  { %v365_v31 = vadd.f32 %v364_v24, %v363_v13  ;;  %v389_v5 = vadd.f32 %v388_v26, %v387_v17  ;;  %v395_v34 = vrot.slane %v394_v29, 4  ;;  %v419_v14 = vsel %vm418_vm2, %v358_v9, %v351_v20 }
 0x1b7   :  { %v384_v35 = vadd.f32 %v383_v48, %v382_v10  ;;  %v553_v36 = vsel %vm426_vm6, %v540_v18, %v552_v62  ;;  %v378_v15 = vrot.slane %v377_v32, 1 }
 0x1b8   :  { %v390_v37 = vrot.slane %v389_v5, 2  ;;  %v396_v7 = vadd.f32 %v395_v34, %v394_v29  ;;  %v421_v38 = vsel %vm420_vm3, %v365_v31, %v419_v14  ;;  %v554_v2 = vsel %vm428_vm7, %v544_v28, %v553_v36 }
 0x1b9   :  { %v385_v40 = vrot.slane %v384_v35, 1  ;;  %v423_v23 = vsel %vm422_vm4, %v372_v11, %v421_v38  ;;  %v379_v41 = vadd.f32 %v378_v15, %v377_v32  ;;  %v555_v21 = vsel %vm430_vm8, %v548_v30, %v554_v2 }
 0x1ba   :  { %v391_v42 = vadd.f32 %v390_v37, %v389_v5  ;;  %v397_v43 = vrot.slane %v396_v7, 2 }
 0x1bb   :  { %v386_v44 = vadd.f32 %v385_v40, %v384_v35  ;;  %v425_v47 = vsel %vm424_vm5, %v379_v41, %v423_v23 }
 0x1bc   :  { %v392_v45 = vrot.slane %v391_v42, 1  ;;  %v398_v46 = vadd.f32 %v397_v43, %v396_v7 }
 0x1bd   :  { %v427_v49 = vsel %vm426_vm6, %v386_v44, %v425_v47 }
 0x1be   :  { %v393_v50 = vadd.f32 %v392_v45, %v391_v42  ;;  %v399_v6 = vrot.slane %v398_v46, 1 }
 0x1c0   :  { %v400_v51 = vadd.f32 %v399_v6, %v398_v46  ;;  %v429_v52 = vsel %vm428_vm7, %v393_v50, %v427_v49 }
 0x1c2   :  { %v431_v53 = vsel %vm430_vm8, %v400_v51, %v429_v52 }
 0x1c3   :  { %621 = vmatmul.mubr.msk.f32.vlgmr.msra.gmra.mxu1 %vm35_vm0, %v431_v53 }
 0x283   :  { %v500_v54 = vpop.f32.mrf.mxu1 }
 0x284   :  { %v501_v55 = vadd.f32 %v573_v27, %v500_v54 }
 0x285   :  { %v622_v56 = vpop.f32.mrf.mxu1 }
 0x286   :  { %505 = vst.msk [vmem:[%s880_s4] sm:$0xff] %vm504_vm9, %v501_v55 }
 0x287   :  { %558 = vst.msk [vmem:[%s880_s4] sm:$0xff] %vm557_vm10, %v555_v21 }

</bundles_post_ra>
